<compile_context>
chip_gen: v7x
topology: tpu7x:2x2x1
jax: 0.10.0
libtpu: 0.0.40
codegen_flags: <defaults>
</compile_context>

<pallas_src>
import functools

import jax
import jax.numpy as jnp
from jax.experimental import pallas as pl
from jax.experimental.pallas import tpu as pltpu

LANE = 128
MAX_BLOCK_ROWS = 1024   # (1024,128) f32 block = 512 KiB / input / buffer
NUM_CORES = 2           # megacore split for v7x; no-op on single-TC chips


def _focal_bce_sum_kernel(x_ref, t_ref, out_ref, acc_ref, *,
                          block_rows, blocks_per_core, n_valid):
    c = pl.program_id(0)   # core-split axis ("parallel")
    i = pl.program_id(1)   # row-block reduction axis ("arbitrary")

    @pl.when(i == 0)
    def _():
        acc_ref[...] = jnp.zeros_like(acc_ref)

    x = x_ref[...].astype(jnp.float32)
    t = t_ref[...].astype(jnp.float32)

    # Stable BCE from logits (2 transcendentals per element):
    #   log(sigmoid(x))   = min(x, 0)  - log(1 + exp(-|x|))
    #   log(1-sigmoid(x)) = min(-x, 0) - log(1 + exp(-|x|))
    # Both log terms clamped at -100 to match torch.F.binary_cross_entropy.
    softplus_nabs = jnp.log(1.0 + jnp.exp(-jnp.abs(x)))
    log_p = jnp.maximum(jnp.minimum(x, 0.0) - softplus_nabs, -100.0)
    log_1mp = jnp.maximum(jnp.minimum(-x, 0.0) - softplus_nabs, -100.0)
    bce = -(t * log_p + (1.0 - t) * log_1mp)

    # Mask ragged tail / dead (clamped) iterations: element valid iff its flat
    # index in the original .view(-1) tensor is < n_valid.
    # (int32 flat index; fine for < 2**31 elements.)
    row_ids = jax.lax.broadcasted_iota(jnp.int32, (block_rows, LANE), 0)
    col_ids = jax.lax.broadcasted_iota(jnp.int32, (block_rows, LANE), 1)
    global_block = c * blocks_per_core + i
    flat = (global_block * block_rows + row_ids) * LANE + col_ids
    bce = jnp.where(flat < n_valid, bce, 0.0)

    # Vectorized accumulation into the (8,128) VMEM accumulator (VPU adds;
    # no per-step scalar read-modify-write, no per-step full XLU reduce).
    r8 = (block_rows // 8) * 8
    if r8 > 0:
        acc_ref[...] += bce[:r8].reshape(r8 // 8, 8, LANE).sum(axis=0)
    if r8 < block_rows:  # tiny-input path: block_rows == rows, rows % 8 != 0
        acc_ref[0:1, :] += bce[r8:].sum(axis=0, keepdims=True)

    @pl.when(i == pl.num_programs(1) - 1)
    def _():
        out_ref[...] = acc_ref[...]   # lane-dense (8,128) partial-sum slab


def focal_loss_pallas(inputs, targets, alpha=0.3, gamma=2, smooth=1):
    """Forward of the torch focal_loss module. Returns a scalar float32.

    `smooth` is accepted but unused, exactly as in the original torch module.
    """
    del smooth
    x = inputs.reshape(-1)
    t = targets.reshape(-1)
    n = x.shape[0]

    # Only pad the ragged tail up to the 128-lane boundary (no copy when the
    # element count is already a multiple of 128, the common case). Padded
    # elements are masked out inside the kernel anyway.
    pad = (-n) % LANE
    if pad:
        x = jnp.concatenate([x, jnp.zeros((pad,), x.dtype)])
        t = jnp.concatenate([t, jnp.zeros((pad,), t.dtype)])

    rows = (n + pad) // LANE
    x2 = x.reshape(rows, LANE)
    t2 = t.reshape(rows, LANE)

    block_rows = rows if rows < MAX_BLOCK_ROWS else MAX_BLOCK_ROWS
    num_blocks = pl.cdiv(rows, block_rows)
    blocks_per_core = pl.cdiv(num_blocks, NUM_CORES)
    grid = (NUM_CORES, blocks_per_core)

    def in_index(c, i):
        # Clamp so dead iterations (blocks not splitting evenly across cores)
        # re-read a valid block; their contribution is masked to zero.
        return (jnp.minimum(c * blocks_per_core + i, num_blocks - 1), 0)

    kernel = functools.partial(
        _focal_bce_sum_kernel,
        block_rows=block_rows,
        blocks_per_core=blocks_per_core,
        n_valid=n,
    )

    partial_sums = pl.pallas_call(
        kernel,
        out_shape=jax.ShapeDtypeStruct((NUM_CORES * 8, LANE), jnp.float32),
        grid_spec=pltpu.PrefetchScalarGridSpec(
            num_scalar_prefetch=0,
            grid=grid,
            in_specs=[
                pl.BlockSpec((block_rows, LANE), in_index),
                pl.BlockSpec((block_rows, LANE), in_index),
            ],
            out_specs=pl.BlockSpec((8, LANE), lambda c, i: (c, 0)),
            scratch_shapes=[pltpu.VMEM((8, LANE), jnp.float32)],
        ),
        compiler_params=pltpu.CompilerParams(
            dimension_semantics=("parallel", "arbitrary"),
        ),
    )(x2, t2)

    # Final reduction + focal epilogue on the tiny (NUM_CORES*8, 128) output.
    bce = jnp.sum(partial_sums) / jnp.float32(n)
    one_minus = 1.0 - jnp.exp(-bce)
    if isinstance(gamma, int) and gamma == 2:
        modulator = one_minus * one_minus      # avoid pow lowering for gamma=2
    else:
        modulator = one_minus ** gamma
    return (jnp.float32(alpha) * modulator * bce).astype(jnp.float32)


def _focal_loss_ref(inputs, targets, alpha=0.3, gamma=2):
    # Pure-JAX reference matching torch: sigmoid -> clamped-log BCE -> focal.
    p = jax.nn.sigmoid(inputs.reshape(-1).astype(jnp.float32))
    t = targets.reshape(-1).astype(jnp.float32)
    log_p = jnp.maximum(jnp.log(p), -100.0)
    log_1mp = jnp.maximum(jnp.log(1.0 - p), -100.0)
    bce = jnp.mean(-(t * log_p + (1.0 - t) * log_1mp))
    return alpha * (1.0 - jnp.exp(-bce)) ** gamma * bce


if __name__ == "__main__":
    key = jax.random.PRNGKey(0)
    k1, k2 = jax.random.split(key)
    # module forward implies (logits, binary targets) of matching shape; NCHW
    x = jax.random.normal(k1, (2, 4, 16, 16), dtype=jnp.float32)
    t = (jax.random.uniform(k2, (2, 4, 16, 16)) > 0.5).astype(jnp.float32)

    loss = focal_loss_pallas(x, t)
    loss = jax.block_until_ready(loss)

    ref = _focal_loss_ref(x, t)
    assert jnp.allclose(loss, ref, rtol=1e-4, atol=1e-6), (loss, ref)
    print("KERNEL_OK")
</pallas_src>

<mosaic_0001>
module attributes {stable_mosaic.version = 11 : i64} {
  func.func @_focal_bce_sum_kernel(%arg0: i32, %arg1: i32, %arg2: memref<16x128xf32, #tpu.memory_space<vmem>>, %arg3: memref<16x128xf32, #tpu.memory_space<vmem>>, %arg4: memref<8x128xf32, #tpu.memory_space<vmem>>, %arg5: memref<8x128xf32, #tpu.memory_space<vmem>>) attributes {dimension_semantics = [#tpu.dimension_semantics<parallel>, #tpu.dimension_semantics<arbitrary>], iteration_bounds = array<i64: 2, 1>, scalar_prefetch = 0 : i64, scratch_operands = 1 : i64, tpu.core_type = #tpu.core_type<tc>, window_params = [{transform_indices = @transform_0, window_bounds = array<i64: 16, 128>}, {transform_indices = @transform_1, window_bounds = array<i64: 16, 128>}, {transform_indices = @transform_2, window_bounds = array<i64: 8, 128>}]} {
    %c0_i32 = arith.constant 0 : i32
    %0 = arith.cmpi eq, %arg1, %c0_i32 : i32
    %1 = arith.extui %0 : i1 to i32
    %c0_i32_0 = arith.constant 0 : i32
    %2 = arith.cmpi ne, %1, %c0_i32_0 : i32
    scf.if %2 {
      %cst_20 = arith.constant 0.000000e+00 : f32
      %53 = vector.broadcast %cst_20 : f32 to vector<8x128xf32>
      %c0_21 = arith.constant 0 : index
      %c0_22 = arith.constant 0 : index
      %54 = vector.load %arg5[%c0_21, %c0_22] : memref<8x128xf32, #tpu.memory_space<vmem>>, vector<8x128xf32>
      tpu.vector_store %arg5[%c0_21, %c0_22], %53 {strides = array<i32>} : memref<8x128xf32, #tpu.memory_space<vmem>>, vector<8x128xf32>,
    } else {
    }
    %c0 = arith.constant 0 : index
    %c0_1 = arith.constant 0 : index
    %3 = vector.load %arg2[%c0, %c0_1] : memref<16x128xf32, #tpu.memory_space<vmem>>, vector<16x128xf32>
    %c0_2 = arith.constant 0 : index
    %c0_3 = arith.constant 0 : index
    %4 = vector.load %arg3[%c0_2, %c0_3] : memref<16x128xf32, #tpu.memory_space<vmem>>, vector<16x128xf32>
    %5 = math.absf %3 : vector<16x128xf32>
    %cst = arith.constant 0.000000e+00 : f32
    %6 = vector.broadcast %cst : f32 to vector<16x128xf32>
    %7 = arith.subf %6, %5 : vector<16x128xf32>
    %8 = math.exp %7 : vector<16x128xf32>
    %cst_4 = arith.constant 1.000000e+00 : f32
    %9 = vector.broadcast %cst_4 : f32 to vector<16x128xf32>
    %10 = arith.addf %9, %8 : vector<16x128xf32>
    %11 = math.log %10 : vector<16x128xf32>
    %cst_5 = arith.constant 0.000000e+00 : f32
    %12 = vector.broadcast %cst_5 : f32 to vector<16x128xf32>
    %13 = arith.minimumf %3, %12 : vector<16x128xf32>
    %14 = arith.subf %13, %11 : vector<16x128xf32>
    %cst_6 = arith.constant -1.000000e+02 : f32
    %15 = vector.broadcast %cst_6 : f32 to vector<16x128xf32>
    %16 = arith.maximumf %14, %15 : vector<16x128xf32>
    %cst_7 = arith.constant 0.000000e+00 : f32
    %17 = vector.broadcast %cst_7 : f32 to vector<16x128xf32>
    %18 = arith.subf %17, %3 : vector<16x128xf32>
    %cst_8 = arith.constant 0.000000e+00 : f32
    %19 = vector.broadcast %cst_8 : f32 to vector<16x128xf32>
    %20 = arith.minimumf %18, %19 : vector<16x128xf32>
    %21 = arith.subf %20, %11 : vector<16x128xf32>
    %cst_9 = arith.constant -1.000000e+02 : f32
    %22 = vector.broadcast %cst_9 : f32 to vector<16x128xf32>
    %23 = arith.maximumf %21, %22 : vector<16x128xf32>
    %24 = arith.mulf %4, %16 : vector<16x128xf32>
    %cst_10 = arith.constant 1.000000e+00 : f32
    %25 = vector.broadcast %cst_10 : f32 to vector<16x128xf32>
    %26 = arith.subf %25, %4 : vector<16x128xf32>
    %27 = arith.mulf %26, %23 : vector<16x128xf32>
    %28 = arith.addf %24, %27 : vector<16x128xf32>
    %cst_11 = arith.constant 0.000000e+00 : f32
    %29 = vector.broadcast %cst_11 : f32 to vector<16x128xf32>
    %30 = arith.subf %29, %28 : vector<16x128xf32>
    %31 = tpu.iota {dimensions = array<i32: 0>} : vector<16x128xi32>
    %32 = tpu.iota {dimensions = array<i32: 1>} : vector<16x128xi32>
    %c1_i32 = arith.constant 1 : i32
    %33 = arith.muli %arg0, %c1_i32 : i32
    %34 = arith.addi %33, %arg1 : i32
    %c16_i32 = arith.constant 16 : i32
    %35 = arith.muli %34, %c16_i32 : i32
    %36 = vector.broadcast %35 : i32 to vector<16x128xi32>
    %37 = arith.addi %36, %31 : vector<16x128xi32>
    %c128_i32 = arith.constant 128 : i32
    %38 = vector.broadcast %c128_i32 : i32 to vector<16x128xi32>
    %39 = arith.muli %37, %38 : vector<16x128xi32>
    %40 = arith.addi %39, %32 : vector<16x128xi32>
    %c2048_i32 = arith.constant 2048 : i32
    %41 = vector.broadcast %c2048_i32 : i32 to vector<16x128xi32>
    %42 = arith.cmpi slt, %40, %41 : vector<16x128xi32>
    %cst_12 = arith.constant 0.000000e+00 : f32
    %43 = vector.broadcast %cst_12 : f32 to vector<16x128xf32>
    %44 = arith.select %42, %30, %43 : vector<16x128xi1>, vector<16x128xf32>
    %c0_13 = arith.constant 0 : index
    %c0_14 = arith.constant 0 : index
    %45 = vector.load %arg5[%c0_13, %c0_14] : memref<8x128xf32, #tpu.memory_space<vmem>>, vector<8x128xf32>
    %46 = vector.shape_cast %44 : vector<16x128xf32> to vector<2x8x128xf32>
    %cst_15 = arith.constant dense<0.000000e+00> : vector<8x128xf32>
    %47 = vector.multi_reduction <add>, %46, %cst_15 [0] : vector<2x8x128xf32> to vector<8x128xf32>
    %48 = arith.addf %45, %47 : vector<8x128xf32>
    %c0_16 = arith.constant 0 : index
    %c0_17 = arith.constant 0 : index
    %49 = vector.load %arg5[%c0_16, %c0_17] : memref<8x128xf32, #tpu.memory_space<vmem>>, vector<8x128xf32>
    tpu.vector_store %arg5[%c0_16, %c0_17], %48 {strides = array<i32>} : memref<8x128xf32, #tpu.memory_space<vmem>>, vector<8x128xf32>,
    %c0_i32_18 = arith.constant 0 : i32
    %50 = arith.cmpi eq, %arg1, %c0_i32_18 : i32
    %51 = arith.extui %50 : i1 to i32
    %c0_i32_19 = arith.constant 0 : i32
    %52 = arith.cmpi ne, %51, %c0_i32_19 : i32
    scf.if %52 {
      %c0_20 = arith.constant 0 : index
      %c0_21 = arith.constant 0 : index
      %53 = vector.load %arg5[%c0_20, %c0_21] : memref<8x128xf32, #tpu.memory_space<vmem>>, vector<8x128xf32>
      %c0_22 = arith.constant 0 : index
      %c0_23 = arith.constant 0 : index
      %54 = vector.load %arg4[%c0_22, %c0_23] : memref<8x128xf32, #tpu.memory_space<vmem>>, vector<8x128xf32>
      tpu.vector_store %arg4[%c0_22, %c0_23], %53 {strides = array<i32>} : memref<8x128xf32, #tpu.memory_space<vmem>>, vector<8x128xf32>,
    } else {
    }
    return
  }
  func.func @transform_0(%arg0: i32, %arg1: i32) -> (i32, i32) {
    %c1_i32 = arith.constant 1 : i32
    %0 = arith.muli %arg0, %c1_i32 : i32
    %1 = arith.addi %0, %arg1 : i32
    %c0_i32 = arith.constant 0 : i32
    %2 = arith.minsi %1, %c0_i32 : i32
    %c0_i32_0 = arith.constant 0 : i32
    %c0_i32_1 = arith.constant 0 : i32
    return %2, %c0_i32_0 : i32, i32
  }
  func.func @transform_1(%arg0: i32, %arg1: i32) -> (i32, i32) {
    %c1_i32 = arith.constant 1 : i32
    %0 = arith.muli %arg0, %c1_i32 : i32
    %1 = arith.addi %0, %arg1 : i32
    %c0_i32 = arith.constant 0 : i32
    %2 = arith.minsi %1, %c0_i32 : i32
    %c0_i32_0 = arith.constant 0 : i32
    %c0_i32_1 = arith.constant 0 : i32
    return %2, %c0_i32_0 : i32, i32
  }
  func.func @transform_2(%arg0: i32, %arg1: i32) -> (i32, i32) {
    %c0_i32 = arith.constant 0 : i32
    %c0_i32_0 = arith.constant 0 : i32
    return %arg0, %c0_i32 : i32, i32
  }
}

</mosaic_0001>

<bundles_post_ra>
// kernel: tpu_custom_call.1
= control target key start
LH: loop header
LB: loop body
LE: loop exit
PB: predicated region body
PF: predicated region fallthrough
CT: control target
= control target key end

     0   :  { %7 = vsyncpa [#allocation4], 0  ;;  %s952_s0 = inlined_call_operand.hbm [shape: f32[16,128], index: 0, kind: input, shape index: {}]   ;;  %s953_s1 = inlined_call_operand.hbm [shape: f32[16,128], index: 1, kind: input, shape index: {}]   ;;  %s954_s2 = inlined_call_operand.hbm [shape: f32[16,128], index: 2, kind: output, shape index: {}]  }
   0x1   :  { %9 = vsyncpa [#allocation4 + $0x1], 0 }
   0x2   :  { %10 = vsyncpa [#allocation7], 0 }
   0x3   :  { %12 = vsyncpa [#allocation7 + $0x1], 0 }
   0x4   :  { %13 = vsyncpa [#allocation5], 0 }
   0x5   :  { %15 = vsyncpa [#allocation5 + $0x1], 0  ;;  %s740_s9 = smov 0   ;;  %s742_s10 = smov 0  }
   0x6   :  { %s744_s11 = smov 0   ;;  %s746_s12 = smov 0  }
   0x7   :  { %s748_s13 = smov 0   ;;  %s750_s14 = smov 0  }
   0x8   :  { %s752_s15 = smov 0   ;;  %s754_s16 = smov 0  }
   0x9 LB: > { %s429_s17 = sadd.s32 4294967295, %s718_s16   ;;  %s430_s18 = sadd.s32 4294967294, %s718_s16   ;;  %s718_s16 = sphi %s754_s16, %s21_s16   ;;  %s714_s15 = sphi %s752_s15, %s973_s15   ;;  %s710_s14 = sphi %s750_s14, %s972_s14   ;;  %s706_s13 = sphi %s748_s13, %s942_s13   ;;  %s702_s12 = sphi %s746_s12, %s971_s12   ;;  %s698_s11 = sphi %s744_s11, %s970_s11   ;;  %s694_s10 = sphi %s742_s10, %s969_s10   ;;  %s690_s9 = sphi %s740_s9, %s968_s9  }
   0xa   : > { %s33_s19 = sadd.s32 1, %s714_s15  ;;  %p687_p1 = scmp.ne.s32.totalorder %s706_s13, 0 }
   0xb   : > { %p35_p0 = scmp.ge.s32.totalorder %s33_s19, 2  ;;  %p54_p2 = scmp.eq.s32.totalorder %s718_s16, 0 }
   0xc   : > { %p59_p3 = scmp.ne.s32.totalorder %s706_s13, %s702_s12  ;;  %p60_p5 = scmp.eq.s32.totalorder %s429_s17, 0 }
   0xd   : > { %s975_s19 = smov (%p35_p0, %s33_s19), 0  ;;  %p786_p4 = por %p687_p1, %p54_p2 }
   0xe   : > { %p790_p6 = por %p60_p5, %p59_p3  ;;  %s101_s22 = ssub.s32 %s714_s15, %s975_s19 }
   0xf   : > { %p102_p7 = scmp.eq.s32.totalorder %s101_s22, 0  ;;  %s104_s23 = sadd.s32 1, %s698_s11 }
  0x10   : > { %s958_s21 = scalar_select %p790_p6, 1, 0 }
  0x11   : > { %s798_s24 = scalar_select %p102_p7, %s698_s11, %s104_s23  }
  0x12   : > { %p114_p8 = scmp.ne.s32.totalorder %s698_s11, %s694_s10  ;;  %p115_p9 = scmp.eq.s32.totalorder %s429_s17, 1 }
  0x13   : > { %p120_p10 = scmp.ne.s32.totalorder %s694_s10, %s690_s9  ;;  %p121_p11 = scmp.eq.s32.totalorder %s430_s18, 1 }
  0x14   : > { %p804_p12 = por %p115_p9, %p114_p8  ;;  %p467_p1 = scmp.lt.s32.totalorder %s718_s16, 2 }
  0x15   : > { %p809_p0 = por %p121_p11, %p120_p10  ;;  %s720_s27 = smov [#allocation3]  }
  0x16   : > { %s959_s25 = scalar_select %p804_p12, 1, 0 }
  0x17   : > { %s960_s26 = scalar_select %p809_p0, 1, 0 }
  0x18   : > { %s155_s28 = sshll.u32 %s720_s27, 4  ;;  %p816_p2 = pnand %p467_p1, %p786_p4  ;;  %s156_s28 = int_to_ptr.vmem [resolvable:$true] %s155_s28 }
  0x19   : > { %s551_s4 = scalar_lea.hbm %s952_s0, 256 }
  0x1a   : > { %p552_p3 = scmp.ne.s32.totalorder %s952_s0, %s551_s4  ;;  %p553_p5 = pneg %p816_p2 }
  0x1b   : > { %p558_p8 = scmp.lt.u32.totalorder %s551_s4, %s551_s4  ;;  %p560_p9 = scmp.lt.u32.totalorder %s551_s4, %s952_s0 }
  0x1c   : > { %p554_p7 = pnand %p553_p5, %p552_p3 }
  0x1d   : > { %p561_p10 = por %p560_p9, %p558_p8 }
  0x1e   : > { %p555_p4 = pneg %p554_p7 }
  0x20   : > { %p562_p11 = pnand %p561_p10, %p555_p4 }
  0x22   : > { %565 = shalt.err (!%p562_p11)
}
  0x23   : > { %s566_s12 = scalar_lea.vmem %s156_s28, 256  ;;  %s573_s17 = scalar_lea.vmem %s156_s28, 512 }
  0x24   : > { %p567_p1 = scmp.ne.s32.totalorder %s156_s28, %s566_s12  ;;  %p574_p12 = scmp.lt.s32.totalorder %s156_s28, %s156_s28 }
  0x25   : > { %p575_p6 = scmp.lt.s32.totalorder %s573_s17, %s566_s12 }
  0x26   : > { %p569_p13 = pnand %p567_p1, %p553_p5 }
  0x27   : > { %p576_p3 = por %p575_p6, %p574_p12 }
  0x28   : > { %p570_p0 = pneg %p569_p13 }
  0x2a   : > { %p577_p7 = pnand %p576_p3, %p570_p0 }
  0x2c   : > { %580 = shalt.err (!%p577_p7)
}
  0x2d   : > { %s721_s18 = smov 128   ;;  %s722_s20 = smov 8  }
  0x2e   : > { %459 = dma.hbm_to_vmem [thread:$0]  (!%p816_p2), %s952_s0, 256, %s156_s28, [#allocation4], %s721_s18, %s721_s18, %s722_s20  }
  0x2f   : > { %p439_p13 = scmp.ge.s32.totalorder %s718_s16, 1  ;;  %p187_p4 = scmp.lt.s32.totalorder %s718_s16, 3 }
  0x30   : > { %s723_s30 = smov [#allocation6]   ;;  %s581_s6 = scalar_lea.hbm %s953_s1, 256 }
  0x31   : > { %p847_p8 = pnand %p439_p13, %p187_p4  ;;  %s179_s3 = sshll.u32 %s723_s30, 4  ;;  %s180_s3 = int_to_ptr.vmem [resolvable:$true] %s179_s3 }
  0x32   : > { %p582_p6 = scmp.ne.s32.totalorder %s953_s1, %s581_s6  ;;  %p588_p9 = scmp.lt.u32.totalorder %s581_s6, %s581_s6 }
  0x33   : > { %s962_s27 = scalar_select %p847_p8, 1, 0 }
  0x34   : > { %p584_p12 = pnand %p582_p6, %p553_p5  ;;  %p590_p10 = scmp.lt.u32.totalorder %s581_s6, %s953_s1 }
  0x36   : > { %p585_p0 = pneg %p584_p12  ;;  %p591_p11 = por %p590_p10, %p588_p9 }
  0x38   : > { %p592_p1 = pnand %p591_p11, %p585_p0 }
  0x3a   : > { %595 = shalt.err (!%p592_p1)
}
  0x3b   : > { %s596_s17 = scalar_lea.vmem %s180_s3, 256  ;;  %s603_s22 = scalar_lea.vmem %s180_s3, 512 }
  0x3c   : > { %p597_p3 = scmp.ne.s32.totalorder %s180_s3, %s596_s17  ;;  %p604_p4 = scmp.lt.s32.totalorder %s180_s3, %s180_s3 }
  0x3d   : > { %p605_p8 = scmp.lt.s32.totalorder %s603_s22, %s596_s17 }
  0x3e   : > { %p599_p7 = pnand %p597_p3, %p553_p5 }
  0x3f   : > { %p606_p6 = por %p605_p8, %p604_p4 }
  0x40   : > { %p600_p13 = pneg %p599_p7 }
  0x42   : > { %p607_p12 = pnand %p606_p6, %p600_p13 }
  0x44   : > { %610 = shalt.err (!%p607_p12)
}
  0x45   : > { %462 = dma.hbm_to_vmem [thread:$0]  (!%p816_p2), %s953_s1, 256, %s180_s3, [#allocation7], %s721_s18, %s721_s18, %s722_s20  }
  0x46   : > { %p963_p0 = scmp.ne.s32.totalorder %s962_s27, 0 }
  0x47   : > { %s193_s4 = sand.u32 (!%p963_p0), 1, %s706_s13   ;;  %p964_p5 = scmp.ne.s32.totalorder (!%p963_p0), %s958_s21, 0 }
  0x48   : > { %191 = sbr.rel (%p963_p0) target bundleno = 143 (0x8f), region = 28  ;;  %s440_s5 = sshll.u32 (!%p963_p0), %s193_s4, 4 }
  0x49   : > { %s194_s6 = scalar_lea.sflag (!%p963_p0), [#allocation4], %s193_s4  ;;  %s197_s7 = scalar_lea.vmem (!%p963_p0), [#allocation3], %s440_s5 }
  0x4f   : > { %676 = dma.done.wait (%p964_p5), %s194_s6, 256  }
  0x50   : > { %678 = vsyncadd (%p964_p5), %s194_s6, 4294967040  ;;  %s203_s29 = scalar_lea.sflag [#allocation7], %s193_s4  ;;  %s881_s8 = scalar_lea.vmem [#allocation6], %s440_s5 }
  0x51   : > { %680 = dma.done.wait (%p964_p5), %s203_s29, 256  }
  0x52   : > { %682 = vsyncadd (%p964_p5), %s203_s29, 4294967040  ;;  %v245_v0 = vld [vmem:[%s197_s7] sm:$0xff]  ;;  %v246_v1 = vld [vmem:[%s197_s7 + $0x8] sm:$0xff]  ;;  %v287_v9 = vlaneseq  ;;  %s443_s21 = sshll.u32 %s710_s14, 4  ;;  %s229_s18 = sand.u32 1, %s694_s10  }
  0x53   : > { %v249_v2 = vand.u32 2147483647, %v245_v0  ;;  %v250_v3 = vand.u32 2147483647, %v246_v1  ;;  %v269_v14 = vsub.f32 0.0, %v245_v0  ;;  %v294_v16 = vstv %s443_s21  ;;  %v247_v23 = vld [vmem:[%s881_s8] sm:$0xff] }
  0x54   : > { %v288_v13 = vshrl.u32 %v287_v9, 7  ;;  %v270_v17 = vsub.f32 0.0, %v246_v1  ;;  %v263_v19 = vmin.f32 %v245_v0, 0.0  ;;  %v264_v24 = vmin.f32 %v246_v1, 0.0  ;;  %v248_v27 = vld [vmem:[%s881_s8 + $0x8] sm:$0xff]  ;;  %s442_s20 = sshll.u32 %s229_s18, 3 }
  0x55   : > { %v251_v4 = vsub.f32 0.0, %v249_v2  ;;  %v252_v5 = vsub.f32 0.0, %v250_v3  ;;  %v271_v20 = vmin.f32 %v269_v14, 0.0  ;;  %v291_v30 = vand.u32 127, %v287_v9  ;;  %s231_s27 = scalar_lea.vmem [#allocation8], %s442_s20  ;;  %s445_s28 = sshll.u32 %s710_s14, 7 }
  0x56   : > { %v289_v15 = vadd.s32 8, %v288_v13  ;;  %v295_v18 = vadd.s32 %v294_v16, %v288_v13  ;;  %v272_v25 = vmin.f32 %v270_v17, 0.0  ;;  %v279_v34 = vsub.f32 1.0, %v247_v23  ;;  %s328_s3 = sshll.u32 %s231_s27, 4  ;;  %s899_s22 = scalar_lea.hbm %s954_s2, %s445_s28  ;;  %s894_s3 = int_to_ptr.vmem [resolvable:$true] %s328_s3 }
  0x57   : > { %v253_v6 = vmul.f32 1.442695, %v251_v4  ;;  %v255_v7 = vmul.f32 1.442695, %v252_v5  ;;  %v280_v38 = vsub.f32 1.0, %v248_v27  ;;  %s315_s23 = scalar_lea.sflag [#allocation5], %s229_s18 }
  0x58   : > { %v296_v21 = vadd.s32 %v294_v16, %v289_v15  ;;  %v297_v31 = vmul.u32 128, %v295_v18  ;;  %s611_s30 = scalar_lea.vmem %s894_s3, 128  ;;  %p965_p8 = scmp.ne.s32.totalorder %s959_s25, 0 }
  0x59   : > { %543 = vpow2.f32 %v253_v6  ;;  %p612_p2 = scmp.ne.s32.totalorder %s894_s3, %s611_s30  ;;  %s724_s14 = smov [#allocation8]  }
  0x5a   : > { %545 = vpow2.f32 %v255_v7  ;;  %v298_v35 = vmul.u32 128, %v296_v21  ;;  %v299_v43 = vadd.s32 %v297_v31, %v291_v30  ;;  %s615_s4 = sshll.u32 %s724_s14, 4  ;;  %s616_s4 = int_to_ptr.vmem [resolvable:$false] %s615_s4 }
  0x5b   : > { %p613_p9 = pnand %p612_p2, %p965_p8  ;;  %s617_s5 = scalar_lea.vmem %s616_s4, 256 }
  0x5c   : > { %v300_v46 = vadd.s32 %v298_v35, %v291_v30  ;;  %vm301_vm0 = vcmp.lt.s32.totalorder %v299_v43, 2048  ;;  %p618_p11 = scmp.lt.s32.totalorder %s894_s3, %s616_s4  ;;  %p619_p1 = scmp.lt.s32.totalorder %s617_s5, %s611_s30 }
  0x5d   : > { %p614_p10 = pneg %p613_p9 }
  0x5e   : > { %vm302_vm1 = vcmp.lt.s32.totalorder %v300_v46, 2048  ;;  %p620_p3 = por %p619_p1, %p618_p11 }
  0x60   : > { %p621_p7 = pnand %p620_p3, %p614_p10 }
  0x63   : > { %v544_v8 = vpop.eup %543 }
  0x64   : > { %v546_v10 = vpop.eup %545  ;;  %v257_v11 = vadd.f32 1.0, %v544_v8 }
  0x65   : > { %v258_v12 = vadd.f32 1.0, %v546_v10 }
  0x66   : > { %547 = vlog2.f32 %v257_v11 }
  0x67   : > { %549 = vlog2.f32 %v258_v12 }
  0x70   : > { %v548_v22 = vpop.eup %547 }
  0x71   : > { %v550_v26 = vpop.eup %549  ;;  %v260_v28 = vmul.f32 0.6931472, %v548_v22 }
  0x72   : > { %v262_v29 = vmul.f32 0.6931472, %v550_v26 }
  0x73   : > { %v265_v32 = vsub.f32 %v263_v19, %v260_v28  ;;  %v273_v33 = vsub.f32 %v271_v20, %v260_v28 }
  0x74   : > { %v266_v36 = vsub.f32 %v264_v24, %v262_v29  ;;  %v274_v37 = vsub.f32 %v272_v25, %v262_v29 }
  0x75   : > { %v267_v39 = vmax.f32 %v265_v32, -100.0  ;;  %v275_v40 = vmax.f32 %v273_v33, -100.0 }
  0x76   : > { %v268_v41 = vmax.f32 %v266_v36, -100.0  ;;  %v276_v42 = vmax.f32 %v274_v37, -100.0 }
  0x77   : > { %v277_v44 = vmul.f32 %v267_v39, %v247_v23  ;;  %v281_v45 = vmul.f32 %v279_v34, %v275_v40 }
  0x78   : > { %v278_v47 = vmul.f32 %v268_v41, %v248_v27  ;;  %v282_v48 = vmul.f32 %v280_v38, %v276_v42 }
  0x79   : > { %v283_v49 = vadd.f32 %v281_v45, %v277_v44 }
  0x7a   : > { %v284_v50 = vadd.f32 %v282_v48, %v278_v47 }
  0x7b   : > { %v285_v51 = vsub.f32 0.0, %v283_v49 }
  0x7c   : > { %v286_v52 = vsub.f32 0.0, %v284_v50 }
  0x7d   : > { %v303_v53 = vsel %vm301_vm0, %v285_v51, 0.0 }
  0x7e   : > { %v304_v54 = vsel %vm302_vm1, %v286_v52, 0.0 }
  0x7f   : > { %v306_v55 = vadd.f32 %v304_v54, %v303_v53 }
  0x81   : > { %313 = vst [vmem:[%s231_s27] sm:$0xff] %v306_v55 }
  0x82   : > { %624 = shalt.err (!%p621_p7)
}
  0x83   : > { %s625_s6 = scalar_lea.hbm %s899_s22, 128  ;;  %s629_s8 = scalar_lea.hbm %s954_s2, 256 }
  0x84   : > { %p626_p13 = scmp.ne.s32.totalorder %s899_s22, %s625_s6  ;;  %p630_p12 = scmp.lt.u32.totalorder %s899_s22, %s954_s2 }
  0x85   : > { %p631_p0 = scmp.lt.u32.totalorder %s629_s8, %s625_s6  ;;  %p633_p2 = scmp.lt.u32.totalorder %s625_s6, %s899_s22 }
  0x86   : > { %p627_p4 = pnand %p626_p13, %p965_p8 }
  0x87   : > { %p632_p5 = por %p631_p0, %p630_p12 }
  0x88   : > { %p628_p6 = pneg %p627_p4 }
  0x89   : > { %p634_p9 = por %p633_p2, %p632_p5 }
  0x8b   : > { %p635_p10 = pnand %p634_p9, %p628_p6 }
  0x8d   : > { %638 = shalt.err (!%p635_p10)
}
  0x8e   : > { %454 = dma.vmem_to_hbm [thread:$0]  (%p965_p8), %s894_s3, 128, %s899_s22, %s315_s23  }
  0x8f PF: > { %s340_s20 = sand.u32 1, %s690_s9   ;;  %p966_p11 = scmp.ne.s32.totalorder %s960_s26, 0 }
  0x90   : > { %p967_p1 = scmp.ge.s32.totalorder %s718_s16, 2  ;;  %s341_s27 = scalar_lea.sflag [#allocation5], %s340_s20 }
  0x92   : > { %p464_p3 = pnand %p967_p1, %p966_p11 }
  0x94   : > { %684 = dma.done.wait (!%p464_p3), %s341_s27, 128  }
  0x95   : > { %686 = vsyncadd (!%p464_p3), %s341_s27, 4294967168  ;;  %s21_s16 = sadd.s32 1, %s718_s16   ;;  %s968_s9 = smov %s694_s10 }
  0x96   : > { %p18_p7 = scmp.ge.s32.totalorder %s21_s16, 4   ;;  %s969_s10 = smov %s698_s11 }
  0x97   : > { %s970_s11 = smov %s798_s24  ;;  %s971_s12 = smov %s706_s13 }
  0x98   : > { %s942_s13 = smov 0   ;;  %s972_s14 = smov %s714_s15 }
  0x99   : > { %s973_s15 = smov %s975_s19  ;;  %20 = sbr.rel (!%p18_p7) target bundleno = 9 (0x9), region = 94 }
  0xa0   :  { %346 = vsyncpa [#allocation4], 1 }
  0xa1   :  { %348 = vsyncpa [#allocation4 + $0x1], 1 }
  0xa2   :  { %349 = vsyncpa [#allocation7], 1 }
  0xa3   :  { %351 = vsyncpa [#allocation7 + $0x1], 1 }
  0xa4   :  { %352 = vsyncpa [#allocation5], 1 }
  0xa5   :  { %354 = vsyncpa [#allocation5 + $0x1], 1 }

</bundles_post_ra>
